<compile_context>
chip_gen: v7x
topology: tpu7x:2x2x1
jax: 0.10.0
libtpu: 0.0.40
codegen_flags: <defaults>
</compile_context>

<pallas_src>
import functools

import jax
import jax.numpy as jnp
from jax.experimental import pallas as pl
from jax.experimental.pallas import tpu as pltpu


# Padded layer dims (lane-dense).  True dims: 1024, 392, 98, 14, 3.
D_IN, D0, D1, D2, D3 = 1024, 512, 128, 128, 128
W123_ROWS = D0 + D1 + D2          # fused [lin1; lin2; lin3] buffer rows
N_CLASSES = 3


def _round_up(n, m):
    return ((n + m - 1) // m) * m


def mlp_kernel(x_ref, w0_ref, w123_ref, o_ref):
    # x_ref:    (TB, 1024) f32   -- batch tile of flattened inputs
    # w0_ref:   (1024, 512) bf16 -- lin0, transposed + padded (constant index_map)
    # w123_ref: (768, 128)  bf16 -- [lin1 (512,128); lin2 (128,128); lin3 (128,128)]
    # o_ref:    (TB, 128)   f32  -- softmax probs, valid in lanes 0..2
    x = x_ref[...].astype(jnp.bfloat16)                                       # cast in-kernel (VPU, free)

    h = jnp.dot(x, w0_ref[...], preferred_element_type=jnp.float32)          # (TB, 512)
    h = jnp.maximum(h, 0.0).astype(jnp.bfloat16)

    h = jnp.dot(h, w123_ref[0:D0, :], preferred_element_type=jnp.float32)    # (TB, 128)
    h = jnp.maximum(h, 0.0).astype(jnp.bfloat16)

    h = jnp.dot(h, w123_ref[D0:D0 + D1, :], preferred_element_type=jnp.float32)
    h = jnp.maximum(h, 0.0).astype(jnp.bfloat16)

    logits = jnp.dot(h, w123_ref[D0 + D1:W123_ROWS, :],
                     preferred_element_type=jnp.float32)                     # (TB, 128)

    # Softmax only over the 3 real classes (padded lanes -> -inf).
    lane = jax.lax.broadcasted_iota(jnp.int32, logits.shape, 1)
    logits = jnp.where(lane < N_CLASSES, logits, -jnp.inf)

    m = jnp.max(logits, axis=-1, keepdims=True)
    e = jnp.exp(logits - m)
    denom = jnp.sum(e, axis=-1, keepdims=True)
    o_ref[...] = e / denom                                                    # exact normalization


def init_params(key):
    """Torch-like init: Linear(out, in) weights, U(-1/sqrt(in), 1/sqrt(in)), bias=False."""
    dims = {"lin0": (392, 1024), "lin1": (98, 392), "lin2": (14, 98), "lin3": (3, 14)}
    params = {}
    for name, (out_f, in_f) in dims.items():
        key, sub = jax.random.split(key)
        bound = 1.0 / (in_f ** 0.5)
        params[name] = jax.random.uniform(
            sub, (out_f, in_f), dtype=jnp.float32, minval=-bound, maxval=bound
        )
    return params


def prepare_params(params):
    """One-time prep (outside the hot path): transpose to (in, out), zero-pad to
    lane-dense dims, cast bf16, fuse lin1/lin2/lin3 into one buffer."""
    def prep(w, in_pad, out_pad):
        out_f, in_f = w.shape
        wt = w.T.astype(jnp.bfloat16)                       # (in, out)
        return jnp.pad(wt, ((0, in_pad - in_f), (0, out_pad - out_f)))

    w0 = prep(params["lin0"], D_IN, D0)                     # (1024, 512)
    w1 = prep(params["lin1"], D0, D1)                       # (512, 128)
    w2 = prep(params["lin2"], D1, D2)                       # (128, 128)
    w3 = prep(params["lin3"], D2, D3)                       # (128, 128)
    w123 = jnp.concatenate([w1, w2, w3], axis=0)            # (768, 128)
    return {"w0": w0, "w123": w123}


@jax.jit
def _forward_rows(x_rows, w0, w123):
    """Batched forward on (B, 1024) f32 rows -> (B, 3) softmax probs."""
    B = x_rows.shape[0]
    # Fill the 256-wide MXU on v6e/v7x when the batch is large; keep the tile
    # small (multiple of 8) for tiny batches so padding overhead stays trivial.
    tb = 256 if B >= 256 else max(8, _round_up(B, 8))
    Bp = _round_up(B, tb)
    x_pad = jnp.pad(x_rows.astype(jnp.float32), ((0, Bp - B), (0, 0)))

    out = pl.pallas_call(
        mlp_kernel,
        out_shape=jax.ShapeDtypeStruct((Bp, D3), jnp.float32),
        grid=(Bp // tb,),
        in_specs=[
            pl.BlockSpec((tb, D_IN), lambda i: (i, 0)),          # x: per-step batch tile
            pl.BlockSpec((D_IN, D0), lambda i: (0, 0)),          # w0: constant -> loaded once
            pl.BlockSpec((W123_ROWS, D3), lambda i: (0, 0)),     # w123: constant -> loaded once
        ],
        out_specs=pl.BlockSpec((tb, D3), lambda i: (i, 0)),
        compiler_params=pltpu.CompilerParams(
            dimension_semantics=("parallel",)),                  # shards batch across TCs on v7x
    )(x_pad, w0, w123)
    return out[:B, :N_CLASSES]


def test_net_forward(x, prepped):
    """Single-sample path, matching PyTorch semantics exactly:
    torch.flatten(x) -> (1024,) -> MLP -> softmax over the 3 outputs."""
    x_row = x.reshape(1, -1)                                     # (1, 1024), free bitcast
    return _forward_rows(x_row, prepped["w0"], prepped["w123"])[0]


def test_net_batched(xb, prepped):
    """Throughput path: (B, ...) where each sample flattens to 1024 features."""
    B = xb.shape[0]
    return _forward_rows(xb.reshape(B, -1), prepped["w0"], prepped["w123"])

# TODO(synk): for strict batch-1 serving loops, the remaining win is P10
# cross-call weight residency (setup pallas_call returning SEMAPHORE+VMEM refs
# consumed by the forward kernel) instead of re-DMAing weights each call.


def _ref_forward_single(x, params):
    """Pure-JAX f32 reference of the PyTorch forward (single sample)."""
    h = x.reshape(-1)
    h = jnp.maximum(h @ params["lin0"].T, 0.0)
    h = jnp.maximum(h @ params["lin1"].T, 0.0)
    h = jnp.maximum(h @ params["lin2"].T, 0.0)
    logits = h @ params["lin3"].T
    return jax.nn.softmax(logits)


if __name__ == "__main__":
    key = jax.random.PRNGKey(0)
    kx, kb, kp = jax.random.split(key, 3)
    params = init_params(kp)
    prepped = prepare_params(params)                             # one-time, outside hot path

    # Single-sample path (exact PyTorch forward semantics): NCHW (1,1,32,32) -> 1024 feats.
    x = jax.random.normal(kx, (1, 1, 32, 32), dtype=jnp.float32)
    y = test_net_forward(x, prepped)
    jax.block_until_ready(y)

    y_ref = _ref_forward_single(x, params)
    assert y.shape == (N_CLASSES,)
    assert bool(jnp.all(y >= 0.0))
    assert abs(float(jnp.sum(y)) - 1.0) < 1e-5                   # exact normalization now
    assert float(jnp.max(jnp.abs(y - y_ref))) < 5e-2             # bf16-weight tolerance

    # Batched throughput path: weights DMA'd once, held resident across grid steps.
    xb = jax.random.normal(kb, (16, 1, 32, 32), dtype=jnp.float32)
    yb = test_net_batched(xb, prepped)
    jax.block_until_ready(yb)
    assert yb.shape == (16, N_CLASSES)
    assert bool(jnp.all(jnp.abs(jnp.sum(yb, axis=-1) - 1.0) < 1e-5))

    print("KERNEL_OK")
</pallas_src>

<mosaic_0001>
module attributes {stable_mosaic.version = 11 : i64} {
  func.func @mlp_kernel(%arg0: i32, %arg1: memref<8x1024xf32, #tpu.memory_space<vmem>>, %arg2: memref<1024x512xbf16, #tpu.memory_space<vmem>>, %arg3: memref<768x128xbf16, #tpu.memory_space<vmem>>, %arg4: memref<8x128xf32, #tpu.memory_space<vmem>>) attributes {dimension_semantics = [#tpu.dimension_semantics<parallel>], iteration_bounds = array<i64: 1>, scalar_prefetch = 0 : i64, scratch_operands = 0 : i64, tpu.core_type = #tpu.core_type<tc>, window_params = [{transform_indices = @transform_0, window_bounds = array<i64: 8, 1024>}, {pipeline_mode = #tpu.pipeline_mode<synchronous>, transform_indices = @transform_1, window_bounds = array<i64: 1024, 512>}, {pipeline_mode = #tpu.pipeline_mode<synchronous>, transform_indices = @transform_2, window_bounds = array<i64: 768, 128>}, {transform_indices = @transform_3, window_bounds = array<i64: 8, 128>}]} {
    %c0 = arith.constant 0 : index
    %c0_0 = arith.constant 0 : index
    %0 = vector.load %arg1[%c0, %c0_0] : memref<8x1024xf32, #tpu.memory_space<vmem>>, vector<8x1024xf32>
    %1 = arith.truncf %0 : vector<8x1024xf32> to vector<8x1024xbf16>
    %c0_1 = arith.constant 0 : index
    %c0_2 = arith.constant 0 : index
    %2 = vector.load %arg2[%c0_1, %c0_2] : memref<1024x512xbf16, #tpu.memory_space<vmem>>, vector<1024x512xbf16>
    %cst = arith.constant dense<0.000000e+00> : vector<8x512xf32>
    %3 = tpu.matmul %1, %2, %cst {dimension_numbers = #tpu.dot_dimension_numbers<[1], [0], [0], [1], [0, 0, 1, 1], [], []>} : vector<8x1024xbf16>, vector<1024x512xbf16>, vector<8x512xf32> -> vector<8x512xf32>
    %cst_3 = arith.constant 0.000000e+00 : f32
    %4 = vector.broadcast %cst_3 : f32 to vector<8x512xf32>
    %5 = arith.maximumf %3, %4 : vector<8x512xf32>
    %6 = arith.truncf %5 : vector<8x512xf32> to vector<8x512xbf16>
    %c0_4 = arith.constant 0 : index
    %c0_5 = arith.constant 0 : index
    %7 = vector.load %arg3[%c0_4, %c0_5] : memref<768x128xbf16, #tpu.memory_space<vmem>>, vector<512x128xbf16>
    %cst_6 = arith.constant dense<0.000000e+00> : vector<8x128xf32>
    %8 = tpu.matmul %6, %7, %cst_6 {dimension_numbers = #tpu.dot_dimension_numbers<[1], [0], [0], [1], [0, 0, 1, 1], [], []>} : vector<8x512xbf16>, vector<512x128xbf16>, vector<8x128xf32> -> vector<8x128xf32>
    %cst_7 = arith.constant 0.000000e+00 : f32
    %9 = vector.broadcast %cst_7 : f32 to vector<8x128xf32>
    %10 = arith.maximumf %8, %9 : vector<8x128xf32>
    %11 = arith.truncf %10 : vector<8x128xf32> to vector<8x128xbf16>
    %c512 = arith.constant 512 : index
    %c0_8 = arith.constant 0 : index
    %12 = vector.load %arg3[%c512, %c0_8] : memref<768x128xbf16, #tpu.memory_space<vmem>>, vector<128x128xbf16>
    %cst_9 = arith.constant dense<0.000000e+00> : vector<8x128xf32>
    %13 = tpu.matmul %11, %12, %cst_9 {dimension_numbers = #tpu.dot_dimension_numbers<[1], [0], [0], [1], [0, 0, 1, 1], [], []>} : vector<8x128xbf16>, vector<128x128xbf16>, vector<8x128xf32> -> vector<8x128xf32>
    %cst_10 = arith.constant 0.000000e+00 : f32
    %14 = vector.broadcast %cst_10 : f32 to vector<8x128xf32>
    %15 = arith.maximumf %13, %14 : vector<8x128xf32>
    %16 = arith.truncf %15 : vector<8x128xf32> to vector<8x128xbf16>
    %c640 = arith.constant 640 : index
    %c0_11 = arith.constant 0 : index
    %17 = vector.load %arg3[%c640, %c0_11] : memref<768x128xbf16, #tpu.memory_space<vmem>>, vector<128x128xbf16>
    %cst_12 = arith.constant dense<0.000000e+00> : vector<8x128xf32>
    %18 = tpu.matmul %16, %17, %cst_12 {dimension_numbers = #tpu.dot_dimension_numbers<[1], [0], [0], [1], [0, 0, 1, 1], [], []>} : vector<8x128xbf16>, vector<128x128xbf16>, vector<8x128xf32> -> vector<8x128xf32>
    %19 = tpu.iota {dimensions = array<i32: 1>} : vector<8x128xi32>
    %c3_i32 = arith.constant 3 : i32
    %20 = vector.broadcast %c3_i32 : i32 to vector<8x128xi32>
    %21 = arith.cmpi slt, %19, %20 : vector<8x128xi32>
    %cst_13 = arith.constant 0xFF800000 : f32
    %22 = vector.broadcast %cst_13 : f32 to vector<8x128xf32>
    %23 = arith.select %21, %18, %22 : vector<8x128xi1>, vector<8x128xf32>
    %cst_14 = arith.constant dense<0xFF800000> : vector<8xf32>
    %24 = vector.multi_reduction <maximumf>, %23, %cst_14 [1] : vector<8x128xf32> to vector<8xf32>
    %25 = vector.shape_cast %24 : vector<8xf32> to vector<8x1xf32>
    %26 = vector.broadcast %25 : vector<8x1xf32> to vector<8x128xf32>
    %27 = arith.subf %23, %26 : vector<8x128xf32>
    %28 = math.exp %27 : vector<8x128xf32>
    %cst_15 = arith.constant dense<0.000000e+00> : vector<8xf32>
    %29 = vector.multi_reduction <add>, %28, %cst_15 [1] : vector<8x128xf32> to vector<8xf32>
    %30 = vector.shape_cast %29 : vector<8xf32> to vector<8x1xf32>
    %31 = vector.broadcast %30 : vector<8x1xf32> to vector<8x128xf32>
    %32 = arith.divf %28, %31 : vector<8x128xf32>
    %c0_16 = arith.constant 0 : index
    %c0_17 = arith.constant 0 : index
    %33 = vector.load %arg4[%c0_16, %c0_17] : memref<8x128xf32, #tpu.memory_space<vmem>>, vector<8x128xf32>
    tpu.vector_store %arg4[%c0_16, %c0_17], %32 {strides = array<i32>} : memref<8x128xf32, #tpu.memory_space<vmem>>, vector<8x128xf32>,
    return
  }
  func.func @transform_0(%arg0: i32) -> (i32, i32) {
    %c0_i32 = arith.constant 0 : i32
    %c0_i32_0 = arith.constant 0 : i32
    return %arg0, %c0_i32 : i32, i32
  }
  func.func @transform_1(%arg0: i32) -> (i32, i32) {
    %c0_i32 = arith.constant 0 : i32
    %c0_i32_0 = arith.constant 0 : i32
    %c0_i32_1 = arith.constant 0 : i32
    return %c0_i32, %c0_i32_0 : i32, i32
  }
  func.func @transform_2(%arg0: i32) -> (i32, i32) {
    %c0_i32 = arith.constant 0 : i32
    %c0_i32_0 = arith.constant 0 : i32
    %c0_i32_1 = arith.constant 0 : i32
    return %c0_i32, %c0_i32_0 : i32, i32
  }
  func.func @transform_3(%arg0: i32) -> (i32, i32) {
    %c0_i32 = arith.constant 0 : i32
    %c0_i32_0 = arith.constant 0 : i32
    return %arg0, %c0_i32 : i32, i32
  }
}

</mosaic_0001>

<bundles_post_ra>
// kernel: _forward_rows.1
= control target key start
LH: loop header
LB: loop body
LE: loop exit
PB: predicated region body
PF: predicated region fallthrough
CT: control target
= control target key end

     0   :  { %8 = vsyncpa [#allocation3], 0  ;;  %s3518_s0 = inlined_call_operand.vmem [shape: f32[8,1024], index: 0, kind: input, shape index: {}]   ;;  %s3519_s1 = inlined_call_operand.hbm [shape: bf16[1024,512], index: 1, kind: input, shape index: {}]   ;;  %s3520_s2 = inlined_call_operand.hbm [shape: bf16[768,128], index: 2, kind: input, shape index: {}]   ;;  %s3521_s3 = inlined_call_operand.vmem [shape: f32[8,128], index: 3, kind: output, shape index: {}]  }
   0x1   :  { %9 = vsyncpa [#allocation5], 0  ;;  %s3421_s12 = smov [#allocation2]   ;;  %s3373_s16 = scalar_lea.hbm %s3519_s1, 32768 }
   0x2   :  { %s17_s13 = sshll.u32 %s3421_s12, 4  ;;  %p3374_p0 = scmp.ne.s32.totalorder %s3519_s1, %s3373_s16  ;;  %s18_s13 = int_to_ptr.vmem [resolvable:$true] %s17_s13 }
   0x3   :  { %p3377_p1 = scmp.lt.u32.totalorder %s3373_s16, %s3519_s1 }
   0x5   :  { %p3379_p2 = pnand %p3377_p1, %p3374_p0 }
   0x7   :  { %3382 = shalt.err (!%p3379_p2)
}
   0x8   :  { %s3383_s21 = scalar_lea.vmem %s18_s13, 32768  ;;  %p3388_p4 = scmp.lt.s32.totalorder %s18_s13, %s18_s13 }
   0x9   :  { %p3384_p3 = scmp.ne.s32.totalorder %s18_s13, %s3383_s21  ;;  %p3389_p5 = scmp.lt.s32.totalorder %s3383_s21, %s3383_s21 }
   0xb   :  { %p3390_p6 = por %p3389_p5, %p3388_p4 }
   0xd   :  { %p3391_p7 = pnand %p3390_p6, %p3384_p3 }
   0xf   :  { %3394 = shalt.err (!%p3391_p7)
}
  0x10   :  { %s3422_s22 = smov 256   ;;  %s3423_s23 = smov 16  }
  0x11   :  { %23 = dma.hbm_to_vmem [thread:$0]  %s3519_s1, 32768, %s18_s13, [#allocation3], %s3422_s22, %s3422_s22, %s3423_s23  }
  0x12   :  { %s3424_s26 = smov [#allocation4]   ;;  %s3395_s30 = scalar_lea.hbm %s3520_s2, 6144 }
  0x13   :  { %s29_s27 = sshll.u32 %s3424_s26, 4  ;;  %p3396_p8 = scmp.ne.s32.totalorder %s3520_s2, %s3395_s30  ;;  %s30_s27 = int_to_ptr.vmem [resolvable:$true] %s29_s27 }
  0x14   :  { %p3399_p9 = scmp.lt.u32.totalorder %s3395_s30, %s3520_s2 }
  0x16   :  { %p3401_p10 = pnand %p3399_p9, %p3396_p8 }
  0x18   :  { %3404 = shalt.err (!%p3401_p10)
}
  0x19   :  { %s3405_s8 = scalar_lea.vmem %s30_s27, 6144  ;;  %p3410_p12 = scmp.lt.s32.totalorder %s30_s27, %s30_s27 }
  0x1a   :  { %p3406_p11 = scmp.ne.s32.totalorder %s30_s27, %s3405_s8  ;;  %p3411_p13 = scmp.lt.s32.totalorder %s3405_s8, %s3405_s8 }
  0x1c   :  { %p3412_p0 = por %p3411_p13, %p3410_p12 }
  0x1e   :  { %p3413_p1 = pnand %p3412_p0, %p3406_p11 }
  0x20   :  { %3416 = shalt.err (!%p3413_p1)
}
  0x21   :  { %s3425_s1 = smov 64   ;;  %s3426_s9 = smov 4  }
  0x22   :  { %35 = dma.hbm_to_vmem [thread:$0]  %s3520_s2, 6144, %s30_s27, [#allocation5], %s3425_s1, %s3425_s1, %s3426_s9  }
  0x23   :  { %3417 = dma.done.wait [#allocation3], 32768  }
  0x24   :  { %3418 = vsyncadd [#allocation3], 4294934528 }
  0x25   :  { %3419 = dma.done.wait [#allocation5], 6144  }
  0x26   :  { %3420 = vsyncadd [#allocation5], 4294961152  ;;  %v2937_v0 = vld [vmem:[#allocation2 + $0x4] ss:$16 sps:$4 sm:$0xff]   ;;  %v2939_v1 = vld [vmem:[#allocation2 + $0xc] ss:$16 sps:$4 sm:$0xff]  }
  0x27   :  { %1595 = vmatprep.subr.bf16.mxu0 %v2937_v0  ;;  %v2941_v2 = vld [vmem:[#allocation2] ss:$16 sps:$4 sm:$0xff]   ;;  %v2942_v3 = vld [vmem:[#allocation2 + $0x8] ss:$16 sps:$4 sm:$0xff]   ;;  %1759 = vmatprep.subr.bf16.mxu1 %v2939_v1  ;;  %v2943_v4 = vld [vmem:[#allocation2 + $0x24] ss:$16 sps:$4 sm:$0xff]  }
  0x28   :  { %1596 = vmatpush1.bf16.msra.mxu0 %v2941_v2  ;;  %1760 = vmatpush1.bf16.msra.mxu1 %v2942_v3  ;;  %v2945_v5 = vld [vmem:[#allocation2 + $0x2c] ss:$16 sps:$4 sm:$0xff]   ;;  %v2947_v6 = vld [vmem:[#allocation2 + $0x20] ss:$16 sps:$4 sm:$0xff]   ;;  %v2948_v7 = vld [vmem:[#allocation2 + $0x28] ss:$16 sps:$4 sm:$0xff]  }
  0x29   :  { %1597 = vmatprep.subr.bf16.mxu0 %v2943_v4  ;;  %1761 = vmatprep.subr.bf16.mxu1 %v2945_v5  ;;  %v2949_v8 = vld [vmem:[#allocation2 + $0x44] ss:$16 sps:$4 sm:$0xff]   ;;  %v2951_v9 = vld [vmem:[#allocation2 + $0x4c] ss:$16 sps:$4 sm:$0xff]   ;;  %v2953_v10 = vld [vmem:[#allocation2 + $0x40] ss:$16 sps:$4 sm:$0xff]  }
  0x2a   :  { %v2954_v11 = vld [vmem:[#allocation2 + $0x48] ss:$16 sps:$4 sm:$0xff]   ;;  %v2955_v12 = vld [vmem:[#allocation2 + $0x64] ss:$16 sps:$4 sm:$0xff]   ;;  %v2957_v13 = vld [vmem:[#allocation2 + $0x6c] ss:$16 sps:$4 sm:$0xff]  }
  0x2b   :  { %v2959_v14 = vld [vmem:[#allocation2 + $0x60] ss:$16 sps:$4 sm:$0xff]   ;;  %v2960_v15 = vld [vmem:[#allocation2 + $0x68] ss:$16 sps:$4 sm:$0xff]   ;;  %v2961_v16 = vld [vmem:[#allocation2 + $0x84] ss:$16 sps:$4 sm:$0xff]  }
  0x2c   :  { %1598 = vmatpush1.bf16.msra.mxu0 %v2947_v6  ;;  %1762 = vmatpush1.bf16.msra.mxu1 %v2948_v7  ;;  %v2963_v17 = vld [vmem:[#allocation2 + $0x8c] ss:$16 sps:$4 sm:$0xff]   ;;  %v2965_v18 = vld [vmem:[#allocation2 + $0x80] ss:$16 sps:$4 sm:$0xff]   ;;  %v2966_v19 = vld [vmem:[#allocation2 + $0x88] ss:$16 sps:$4 sm:$0xff]  }
  0x2d   :  { %1599 = vmatprep.subr.bf16.mxu0 %v2949_v8  ;;  %1763 = vmatprep.subr.bf16.mxu1 %v2951_v9  ;;  %v2967_v20 = vld [vmem:[#allocation2 + $0xa4] ss:$16 sps:$4 sm:$0xff]   ;;  %v2969_v21 = vld [vmem:[#allocation2 + $0xac] ss:$16 sps:$4 sm:$0xff]   ;;  %v2971_v22 = vld [vmem:[#allocation2 + $0xa0] ss:$16 sps:$4 sm:$0xff]  }
  0x2e   :  { %v2972_v23 = vld [vmem:[#allocation2 + $0xa8] ss:$16 sps:$4 sm:$0xff]   ;;  %v2973_v24 = vld [vmem:[#allocation2 + $0xc4] ss:$16 sps:$4 sm:$0xff]   ;;  %v2975_v25 = vld [vmem:[#allocation2 + $0xcc] ss:$16 sps:$4 sm:$0xff]  }
  0x2f   :  { %v2977_v26 = vld [vmem:[#allocation2 + $0xc0] ss:$16 sps:$4 sm:$0xff]   ;;  %v2978_v27 = vld [vmem:[#allocation2 + $0xc8] ss:$16 sps:$4 sm:$0xff]   ;;  %v2979_v28 = vld [vmem:[#allocation2 + $0xe4] ss:$16 sps:$4 sm:$0xff]  }
  0x30   :  { %1600 = vmatpush1.bf16.msra.mxu0 %v2953_v10  ;;  %1764 = vmatpush1.bf16.msra.mxu1 %v2954_v11  ;;  %v2981_v29 = vld [vmem:[#allocation2 + $0xec] ss:$16 sps:$4 sm:$0xff]   ;;  %v2983_v30 = vld [vmem:[#allocation2 + $0xe0] ss:$16 sps:$4 sm:$0xff]   ;;  %v2984_v31 = vld [vmem:[#allocation2 + $0xe8] ss:$16 sps:$4 sm:$0xff]  }
  0x31   :  { %1601 = vmatprep.subr.bf16.mxu0 %v2955_v12  ;;  %1765 = vmatprep.subr.bf16.mxu1 %v2957_v13  ;;  %v2985_v32 = vld [vmem:[#allocation2 + $0x104] ss:$16 sps:$4 sm:$0xff]   ;;  %v2987_v33 = vld [vmem:[#allocation2 + $0x10c] ss:$16 sps:$4 sm:$0xff]   ;;  %v2989_v34 = vld [vmem:[#allocation2 + $0x100] ss:$16 sps:$4 sm:$0xff]  }
  0x32   :  { %v2990_v35 = vld [vmem:[#allocation2 + $0x108] ss:$16 sps:$4 sm:$0xff]   ;;  %v2991_v36 = vld [vmem:[#allocation2 + $0x124] ss:$16 sps:$4 sm:$0xff]   ;;  %v2993_v37 = vld [vmem:[#allocation2 + $0x12c] ss:$16 sps:$4 sm:$0xff]  }
  0x33   :  { %v2995_v38 = vld [vmem:[#allocation2 + $0x120] ss:$16 sps:$4 sm:$0xff]   ;;  %v2996_v39 = vld [vmem:[#allocation2 + $0x128] ss:$16 sps:$4 sm:$0xff]   ;;  %v2997_v40 = vld [vmem:[#allocation2 + $0x144] ss:$16 sps:$4 sm:$0xff]  }
  0x34   :  { %1602 = vmatpush1.bf16.msra.mxu0 %v2959_v14  ;;  %1766 = vmatpush1.bf16.msra.mxu1 %v2960_v15  ;;  %v2999_v41 = vld [vmem:[#allocation2 + $0x14c] ss:$16 sps:$4 sm:$0xff]   ;;  %v3001_v42 = vld [vmem:[#allocation2 + $0x140] ss:$16 sps:$4 sm:$0xff]   ;;  %v3002_v43 = vld [vmem:[#allocation2 + $0x148] ss:$16 sps:$4 sm:$0xff]  }
  0x35   :  { %1603 = vmatprep.subr.bf16.mxu0 %v2961_v16  ;;  %1767 = vmatprep.subr.bf16.mxu1 %v2963_v17  ;;  %v3003_v44 = vld [vmem:[#allocation2 + $0x164] ss:$16 sps:$4 sm:$0xff]   ;;  %v3005_v45 = vld [vmem:[#allocation2 + $0x16c] ss:$16 sps:$4 sm:$0xff]   ;;  %v3007_v47 = vld [vmem:[#allocation2 + $0x160] ss:$16 sps:$4 sm:$0xff]  }
  0x36   :  { %v44_v46 = vld [vmem:[%s3518_s0 + $0x8] sm:$0xff]  ;;  %v3009_v50 = vld [vmem:[#allocation2 + $0x184] ss:$16 sps:$4 sm:$0xff]   ;;  %v3013_v52 = vld [vmem:[#allocation2 + $0x180] ss:$16 sps:$4 sm:$0xff]   ;;  %vm3428_vm0 = vmmov 0  }
  0x37   :  { %v52_v48 = vpack.c.bf16 %v44_v46, %v44_v46  ;;  %v3008_v49 = vld [vmem:[#allocation2 + $0x168] ss:$16 sps:$4 sm:$0xff]   ;;  %v3011_v51 = vld [vmem:[#allocation2 + $0x18c] ss:$16 sps:$4 sm:$0xff]   ;;  %v3015_v54 = vld [vmem:[#allocation2 + $0x1a4] ss:$16 sps:$4 sm:$0xff]  }
  0x38   :  { %1604 = vmatpush1.bf16.msra.mxu0 %v2965_v18  ;;  %1768 = vmatpush1.bf16.msra.mxu1 %v2966_v19  ;;  %v3014_v53 = vld [vmem:[#allocation2 + $0x188] ss:$16 sps:$4 sm:$0xff]   ;;  %v3017_v55 = vld [vmem:[#allocation2 + $0x1ac] ss:$16 sps:$4 sm:$0xff]   ;;  %v3019_v56 = vld [vmem:[#allocation2 + $0x1a0] ss:$16 sps:$4 sm:$0xff]  }
  0x39   :  { %1605 = vmatprep.subr.bf16.mxu0 %v2967_v20  ;;  %1769 = vmatprep.subr.bf16.mxu1 %v2969_v21  ;;  %v3020_v57 = vld [vmem:[#allocation2 + $0x1a8] ss:$16 sps:$4 sm:$0xff]   ;;  %v3021_v58 = vld [vmem:[#allocation2 + $0x1c4] ss:$16 sps:$4 sm:$0xff]   ;;  %v3023_v59 = vld [vmem:[#allocation2 + $0x1cc] ss:$16 sps:$4 sm:$0xff]  }
  0x3a   :  { %1627 = vmatprep.mubr.bf16.mxu0 %v52_v48  ;;  %1791 = vmatprep.mubr.bf16.mxu1 %v52_v48  ;;  %v3025_v60 = vld [vmem:[#allocation2 + $0x1c0] ss:$16 sps:$4 sm:$0xff]   ;;  %v3026_v61 = vld [vmem:[#allocation2 + $0x1c8] ss:$16 sps:$4 sm:$0xff]   ;;  %v3027_v62 = vld [vmem:[#allocation2 + $0x1e4] ss:$16 sps:$4 sm:$0xff]  }
  0x3b   :  { %v3029_v63 = vld [vmem:[#allocation2 + $0x1ec] ss:$16 sps:$4 sm:$0xff]   ;;  %v3031_v0 = vld [vmem:[#allocation2 + $0x1e0] ss:$16 sps:$4 sm:$0xff]   ;;  %v3032_v1 = vld [vmem:[#allocation2 + $0x1e8] ss:$16 sps:$4 sm:$0xff]  }
  0x3c   :  { %1606 = vmatpush1.bf16.msra.mxu0 %v2971_v22  ;;  %1770 = vmatpush1.bf16.msra.mxu1 %v2972_v23  ;;  %v43_v2 = vld [vmem:[%s3518_s0] sm:$0xff]  ;;  %v3038_v4 = vld [vmem:[#allocation2 + $0x20c] ss:$16 sps:$4 sm:$0xff]   ;;  %v3036_v7 = vld [vmem:[#allocation2 + $0x208] ss:$16 sps:$4 sm:$0xff]  }
  0x3d   :  { %1607 = vmatprep.subr.bf16.mxu0 %v2973_v24  ;;  %1771 = vmatprep.subr.bf16.mxu1 %v2975_v25  ;;  %v3035_v3 = vld [vmem:[#allocation2 + $0x204] ss:$16 sps:$4 sm:$0xff]   ;;  %v51_v5 = vpack.c.bf16 %v43_v2, %v43_v2  ;;  %v3033_v6 = vld [vmem:[#allocation2 + $0x200] ss:$16 sps:$4 sm:$0xff]   ;;  %v3044_v9 = vld [vmem:[#allocation2 + $0x22c] ss:$16 sps:$4 sm:$0xff]  }
  0x3e   :  { %v3041_v8 = vld [vmem:[#allocation2 + $0x224] ss:$16 sps:$4 sm:$0xff]   ;;  %v3039_v10 = vld [vmem:[#allocation2 + $0x220] ss:$16 sps:$4 sm:$0xff]   ;;  %v3042_v11 = vld [vmem:[#allocation2 + $0x228] ss:$16 sps:$4 sm:$0xff]  }
  0x3f   :  { %v3047_v12 = vld [vmem:[#allocation2 + $0x244] ss:$16 sps:$4 sm:$0xff]   ;;  %v3050_v13 = vld [vmem:[#allocation2 + $0x24c] ss:$16 sps:$4 sm:$0xff]   ;;  %v3045_v14 = vld [vmem:[#allocation2 + $0x240] ss:$16 sps:$4 sm:$0xff]  }
  0x40   :  { %1608 = vmatpush1.bf16.msra.mxu0 %v2977_v26  ;;  %1772 = vmatpush1.bf16.msra.mxu1 %v2978_v27  ;;  %v3048_v15 = vld [vmem:[#allocation2 + $0x248] ss:$16 sps:$4 sm:$0xff]   ;;  %v3053_v16 = vld [vmem:[#allocation2 + $0x264] ss:$16 sps:$4 sm:$0xff]   ;;  %v3056_v17 = vld [vmem:[#allocation2 + $0x26c] ss:$16 sps:$4 sm:$0xff]  }
  0x41   :  { %1609 = vmatprep.subr.bf16.mxu0 %v2979_v28  ;;  %1773 = vmatprep.subr.bf16.mxu1 %v2981_v29  ;;  %v3051_v18 = vld [vmem:[#allocation2 + $0x260] ss:$16 sps:$4 sm:$0xff]   ;;  %v3054_v19 = vld [vmem:[#allocation2 + $0x268] ss:$16 sps:$4 sm:$0xff]   ;;  %v3059_v20 = vld [vmem:[#allocation2 + $0x284] ss:$16 sps:$4 sm:$0xff]  }
  0x42   :  { %v3062_v21 = vld [vmem:[#allocation2 + $0x28c] ss:$16 sps:$4 sm:$0xff]   ;;  %v3057_v22 = vld [vmem:[#allocation2 + $0x280] ss:$16 sps:$4 sm:$0xff]   ;;  %v3060_v23 = vld [vmem:[#allocation2 + $0x288] ss:$16 sps:$4 sm:$0xff]  }
  0x43   :  { %v3065_v24 = vld [vmem:[#allocation2 + $0x2a4] ss:$16 sps:$4 sm:$0xff]   ;;  %v3068_v25 = vld [vmem:[#allocation2 + $0x2ac] ss:$16 sps:$4 sm:$0xff]   ;;  %v3063_v26 = vld [vmem:[#allocation2 + $0x2a0] ss:$16 sps:$4 sm:$0xff]  }
  0x44   :  { %1610 = vmatpush1.bf16.msra.mxu0 %v2983_v30  ;;  %1774 = vmatpush1.bf16.msra.mxu1 %v2984_v31  ;;  %v3066_v27 = vld [vmem:[#allocation2 + $0x2a8] ss:$16 sps:$4 sm:$0xff]   ;;  %v3071_v28 = vld [vmem:[#allocation2 + $0x2c4] ss:$16 sps:$4 sm:$0xff]   ;;  %v3074_v29 = vld [vmem:[#allocation2 + $0x2cc] ss:$16 sps:$4 sm:$0xff]  }
  0x45   :  { %1611 = vmatprep.subr.bf16.mxu0 %v2985_v32  ;;  %1775 = vmatprep.subr.bf16.mxu1 %v2987_v33  ;;  %v46_v30 = vld [vmem:[%s3518_s0 + $0x18] sm:$0xff]  ;;  %v3069_v31 = vld [vmem:[#allocation2 + $0x2c0] ss:$16 sps:$4 sm:$0xff]   ;;  %v3095_v46 = vld [vmem:[#allocation2 + $0x344] ss:$16 sps:$4 sm:$0xff]  }
  0x46   :  { %v54_v32 = vpack.c.bf16 %v46_v30, %v46_v30  ;;  %v3072_v33 = vld [vmem:[#allocation2 + $0x2c8] ss:$16 sps:$4 sm:$0xff]   ;;  %v3093_v48 = vld [vmem:[#allocation2 + $0x340] ss:$16 sps:$4 sm:$0xff]   ;;  %v3125_v2 = vld [vmem:[#allocation2 + $0x3e4] ss:$16 sps:$4 sm:$0xff]  }
  0x47   :  { %v3161_v30 = vld [vmem:[#allocation2 + $0x4a4] ss:$16 sps:$4 sm:$0xff]  }
  0x48   :  { %1612 = vmatpush1.bf16.msra.mxu0 %v2989_v34  ;;  %1776 = vmatpush1.bf16.msra.mxu1 %v2990_v35  ;;  %v3077_v34 = vld [vmem:[#allocation2 + $0x2e4] ss:$16 sps:$4 sm:$0xff]   ;;  %v3080_v35 = vld [vmem:[#allocation2 + $0x2ec] ss:$16 sps:$4 sm:$0xff]  }
  0x49   :  { %1613 = vmatprep.subr.bf16.mxu0 %v2991_v36  ;;  %1777 = vmatprep.subr.bf16.mxu1 %v2993_v37  ;;  %v3075_v36 = vld [vmem:[#allocation2 + $0x2e0] ss:$16 sps:$4 sm:$0xff]   ;;  %v3078_v37 = vld [vmem:[#allocation2 + $0x2e8] ss:$16 sps:$4 sm:$0xff]  }
  0x4c   :  { %1614 = vmatpush1.bf16.msra.mxu0 %v2995_v38  ;;  %1778 = vmatpush1.bf16.msra.mxu1 %v2996_v39  ;;  %v3083_v38 = vld [vmem:[#allocation2 + $0x304] ss:$16 sps:$4 sm:$0xff]   ;;  %v3086_v39 = vld [vmem:[#allocation2 + $0x30c] ss:$16 sps:$4 sm:$0xff]  }
  0x4d   :  { %1615 = vmatprep.subr.bf16.mxu0 %v2997_v40  ;;  %1779 = vmatprep.subr.bf16.mxu1 %v2999_v41  ;;  %v3081_v40 = vld [vmem:[#allocation2 + $0x300] ss:$16 sps:$4 sm:$0xff]   ;;  %v3084_v41 = vld [vmem:[#allocation2 + $0x308] ss:$16 sps:$4 sm:$0xff]  }
  0x50   :  { %1616 = vmatpush1.bf16.msra.mxu0 %v3001_v42  ;;  %1780 = vmatpush1.bf16.msra.mxu1 %v3002_v43  ;;  %v3089_v42 = vld [vmem:[#allocation2 + $0x324] ss:$16 sps:$4 sm:$0xff]   ;;  %v3092_v43 = vld [vmem:[#allocation2 + $0x32c] ss:$16 sps:$4 sm:$0xff]  }
  0x51   :  { %1617 = vmatprep.subr.bf16.mxu0 %v3003_v44  ;;  %1781 = vmatprep.subr.bf16.mxu1 %v3005_v45  ;;  %v3087_v44 = vld [vmem:[#allocation2 + $0x320] ss:$16 sps:$4 sm:$0xff]   ;;  %v3090_v45 = vld [vmem:[#allocation2 + $0x328] ss:$16 sps:$4 sm:$0xff]  }
  0x54   :  { %1618 = vmatpush1.bf16.msra.mxu0 %v3007_v47  ;;  %1782 = vmatpush1.bf16.msra.mxu1 %v3008_v49  ;;  %v3098_v47 = vld [vmem:[#allocation2 + $0x34c] ss:$16 sps:$4 sm:$0xff]   ;;  %v3096_v49 = vld [vmem:[#allocation2 + $0x348] ss:$16 sps:$4 sm:$0xff]  }
  0x55   :  { %1619 = vmatprep.subr.bf16.mxu0 %v3009_v50  ;;  %1783 = vmatprep.subr.bf16.mxu1 %v3011_v51  ;;  %v3101_v50 = vld [vmem:[#allocation2 + $0x364] ss:$16 sps:$4 sm:$0xff]   ;;  %v3104_v51 = vld [vmem:[#allocation2 + $0x36c] ss:$16 sps:$4 sm:$0xff]  }
  0x58   :  { %1620 = vmatpush1.bf16.msra.mxu0 %v3013_v52  ;;  %1784 = vmatpush1.bf16.msra.mxu1 %v3014_v53  ;;  %v3099_v52 = vld [vmem:[#allocation2 + $0x360] ss:$16 sps:$4 sm:$0xff]   ;;  %v3102_v53 = vld [vmem:[#allocation2 + $0x368] ss:$16 sps:$4 sm:$0xff]  }
  0x59   :  { %1621 = vmatprep.subr.bf16.mxu0 %v3015_v54  ;;  %1785 = vmatprep.subr.bf16.mxu1 %v3017_v55  ;;  %v3107_v54 = vld [vmem:[#allocation2 + $0x384] ss:$16 sps:$4 sm:$0xff]   ;;  %v3110_v55 = vld [vmem:[#allocation2 + $0x38c] ss:$16 sps:$4 sm:$0xff]  }
  0x5c   :  { %1622 = vmatpush1.bf16.msra.mxu0 %v3019_v56  ;;  %1786 = vmatpush1.bf16.msra.mxu1 %v3020_v57  ;;  %v3105_v56 = vld [vmem:[#allocation2 + $0x380] ss:$16 sps:$4 sm:$0xff]   ;;  %v3108_v57 = vld [vmem:[#allocation2 + $0x388] ss:$16 sps:$4 sm:$0xff]  }
  0x5d   :  { %1623 = vmatprep.subr.bf16.mxu0 %v3021_v58  ;;  %1787 = vmatprep.subr.bf16.mxu1 %v3023_v59  ;;  %v3113_v58 = vld [vmem:[#allocation2 + $0x3a4] ss:$16 sps:$4 sm:$0xff]   ;;  %v3116_v59 = vld [vmem:[#allocation2 + $0x3ac] ss:$16 sps:$4 sm:$0xff]  }
  0x60   :  { %1624 = vmatpush1.bf16.msra.mxu0 %v3025_v60  ;;  %1788 = vmatpush1.bf16.msra.mxu1 %v3026_v61  ;;  %v3111_v60 = vld [vmem:[#allocation2 + $0x3a0] ss:$16 sps:$4 sm:$0xff]   ;;  %v3114_v61 = vld [vmem:[#allocation2 + $0x3a8] ss:$16 sps:$4 sm:$0xff]  }
  0x61   :  { %1625 = vmatprep.subr.bf16.mxu0 %v3027_v62  ;;  %1789 = vmatprep.subr.bf16.mxu1 %v3029_v63  ;;  %v3119_v62 = vld [vmem:[#allocation2 + $0x3c4] ss:$16 sps:$4 sm:$0xff]   ;;  %v3122_v63 = vld [vmem:[#allocation2 + $0x3cc] ss:$16 sps:$4 sm:$0xff]  }
  0x64   :  { %1626 = vmatpush1.bf16.msra.mxu0 %v3031_v0  ;;  %1790 = vmatpush1.bf16.msra.mxu1 %v3032_v1  ;;  %v3117_v0 = vld [vmem:[#allocation2 + $0x3c0] ss:$16 sps:$4 sm:$0xff]   ;;  %v3120_v1 = vld [vmem:[#allocation2 + $0x3c8] ss:$16 sps:$4 sm:$0xff]  }
  0x65   :  { %1636 = vmatprep.subr.bf16.mxu0 %v3035_v3  ;;  %1800 = vmatprep.subr.bf16.mxu1 %v3038_v4  ;;  %v3128_v3 = vld [vmem:[#allocation2 + $0x3ec] ss:$16 sps:$4 sm:$0xff]   ;;  %v3123_v4 = vld [vmem:[#allocation2 + $0x3e0] ss:$16 sps:$4 sm:$0xff]  }
  0x67   :  { %1628 = vmatmul.mubr.bf16.vlgmr.msra.gmra.mrb[0].mxu0 %v51_v5  ;;  %1792 = vmatmul.mubr.bf16.vlgmr.msra.gmra.mrb[0].mxu1 %v51_v5  ;;  %v3126_v5 = vld [vmem:[#allocation2 + $0x3e8] ss:$16 sps:$4 sm:$0xff]  }
  0x68   :  { %1637 = vmatpush1.bf16.msra.mxu0 %v3033_v6  ;;  %1801 = vmatpush1.bf16.msra.mxu1 %v3036_v7  ;;  %v3131_v6 = vld [vmem:[#allocation2 + $0x404] ss:$16 sps:$4 sm:$0xff]  }
  0x69   :  { %1638 = vmatprep.subr.bf16.mxu0 %v3041_v8  ;;  %1802 = vmatprep.subr.bf16.mxu1 %v3044_v9  ;;  %v45_v7 = vld [vmem:[%s3518_s0 + $0x10] sm:$0xff]  ;;  %v3134_v8 = vld [vmem:[#allocation2 + $0x40c] ss:$16 sps:$4 sm:$0xff]  }
  0x6a   :  { %1668 = vmatprep.mubr.bf16.mxu0 %v54_v32  ;;  %1832 = vmatprep.mubr.bf16.mxu1 %v54_v32  ;;  %v3129_v9 = vld [vmem:[#allocation2 + $0x400] ss:$16 sps:$4 sm:$0xff]  }
  0x6b   :  { %v3159_v32 = vld [vmem:[#allocation2 + $0x4a0] ss:$16 sps:$4 sm:$0xff]  }
  0x6c   :  { %1639 = vmatpush1.bf16.msra.mxu0 %v3039_v10  ;;  %1803 = vmatpush1.bf16.msra.mxu1 %v3042_v11  ;;  %v3132_v10 = vld [vmem:[#allocation2 + $0x408] ss:$16 sps:$4 sm:$0xff]   ;;  %v53_v11 = vpack.c.bf16 %v45_v7, %v45_v7  ;;  %v3224_v7 = vld [vmem:[#allocation2 + $0x5ec] ss:$16 sps:$4 sm:$0xff]  }
  0x6d   :  { %1640 = vmatprep.subr.bf16.mxu0 %v3047_v12  ;;  %1804 = vmatprep.subr.bf16.mxu1 %v3050_v13  ;;  %v3137_v12 = vld [vmem:[#allocation2 + $0x424] ss:$16 sps:$4 sm:$0xff]   ;;  %v3140_v13 = vld [vmem:[#allocation2 + $0x42c] ss:$16 sps:$4 sm:$0xff]  }
  0x70   :  { %1641 = vmatpush1.bf16.msra.mxu0 %v3045_v14  ;;  %1805 = vmatpush1.bf16.msra.mxu1 %v3048_v15  ;;  %v48_v14 = vld [vmem:[%s3518_s0 + $0x28] sm:$0xff] }
  0x71   :  { %1642 = vmatprep.subr.bf16.mxu0 %v3053_v16  ;;  %1806 = vmatprep.subr.bf16.mxu1 %v3056_v17  ;;  %v56_v15 = vpack.c.bf16 %v48_v14, %v48_v14  ;;  %v3135_v16 = vld [vmem:[#allocation2 + $0x420] ss:$16 sps:$4 sm:$0xff]   ;;  %v3138_v17 = vld [vmem:[#allocation2 + $0x428] ss:$16 sps:$4 sm:$0xff]  }
  0x72   :  { %v3228_v14 = vld [vmem:[#allocation2 + $0x608] ss:$16 sps:$4 sm:$0xff]  }
  0x74   :  { %1643 = vmatpush1.bf16.msra.mxu0 %v3051_v18  ;;  %1807 = vmatpush1.bf16.msra.mxu1 %v3054_v19  ;;  %v3143_v18 = vld [vmem:[#allocation2 + $0x444] ss:$16 sps:$4 sm:$0xff]   ;;  %v3146_v19 = vld [vmem:[#allocation2 + $0x44c] ss:$16 sps:$4 sm:$0xff]  }
  0x75   :  { %1644 = vmatprep.subr.bf16.mxu0 %v3059_v20  ;;  %1808 = vmatprep.subr.bf16.mxu1 %v3062_v21  ;;  %v3141_v20 = vld [vmem:[#allocation2 + $0x440] ss:$16 sps:$4 sm:$0xff]   ;;  %v3144_v21 = vld [vmem:[#allocation2 + $0x448] ss:$16 sps:$4 sm:$0xff]  }
  0x78   :  { %1645 = vmatpush1.bf16.msra.mxu0 %v3057_v22  ;;  %1809 = vmatpush1.bf16.msra.mxu1 %v3060_v23  ;;  %v3149_v22 = vld [vmem:[#allocation2 + $0x464] ss:$16 sps:$4 sm:$0xff]   ;;  %v3152_v23 = vld [vmem:[#allocation2 + $0x46c] ss:$16 sps:$4 sm:$0xff]  }
  0x79   :  { %1646 = vmatprep.subr.bf16.mxu0 %v3065_v24  ;;  %1810 = vmatprep.subr.bf16.mxu1 %v3068_v25  ;;  %v3147_v24 = vld [vmem:[#allocation2 + $0x460] ss:$16 sps:$4 sm:$0xff]   ;;  %v3150_v25 = vld [vmem:[#allocation2 + $0x468] ss:$16 sps:$4 sm:$0xff]  }
  0x7c   :  { %1647 = vmatpush1.bf16.msra.mxu0 %v3063_v26  ;;  %1811 = vmatpush1.bf16.msra.mxu1 %v3066_v27  ;;  %v3155_v26 = vld [vmem:[#allocation2 + $0x484] ss:$16 sps:$4 sm:$0xff]   ;;  %v3158_v27 = vld [vmem:[#allocation2 + $0x48c] ss:$16 sps:$4 sm:$0xff]  }
  0x7d   :  { %1648 = vmatprep.subr.bf16.mxu0 %v3071_v28  ;;  %1812 = vmatprep.subr.bf16.mxu1 %v3074_v29  ;;  %v3153_v28 = vld [vmem:[#allocation2 + $0x480] ss:$16 sps:$4 sm:$0xff]   ;;  %v3156_v29 = vld [vmem:[#allocation2 + $0x488] ss:$16 sps:$4 sm:$0xff]  }
  0x80   :  { %1649 = vmatpush1.bf16.msra.mxu0 %v3069_v31  ;;  %1813 = vmatpush1.bf16.msra.mxu1 %v3072_v33  ;;  %v3164_v31 = vld [vmem:[#allocation2 + $0x4ac] ss:$16 sps:$4 sm:$0xff]   ;;  %v3162_v33 = vld [vmem:[#allocation2 + $0x4a8] ss:$16 sps:$4 sm:$0xff]  }
  0x81   :  { %1650 = vmatprep.subr.bf16.mxu0 %v3077_v34  ;;  %1814 = vmatprep.subr.bf16.mxu1 %v3080_v35  ;;  %v3167_v34 = vld [vmem:[#allocation2 + $0x4c4] ss:$16 sps:$4 sm:$0xff]   ;;  %v3170_v35 = vld [vmem:[#allocation2 + $0x4cc] ss:$16 sps:$4 sm:$0xff]  }
  0x84   :  { %1651 = vmatpush1.bf16.msra.mxu0 %v3075_v36  ;;  %1815 = vmatpush1.bf16.msra.mxu1 %v3078_v37  ;;  %v3165_v36 = vld [vmem:[#allocation2 + $0x4c0] ss:$16 sps:$4 sm:$0xff]   ;;  %v3168_v37 = vld [vmem:[#allocation2 + $0x4c8] ss:$16 sps:$4 sm:$0xff]  }
  0x85   :  { %1652 = vmatprep.subr.bf16.mxu0 %v3083_v38  ;;  %1816 = vmatprep.subr.bf16.mxu1 %v3086_v39  ;;  %v3173_v38 = vld [vmem:[#allocation2 + $0x4e4] ss:$16 sps:$4 sm:$0xff]   ;;  %v3176_v39 = vld [vmem:[#allocation2 + $0x4ec] ss:$16 sps:$4 sm:$0xff]  }
  0x88   :  { %1653 = vmatpush1.bf16.msra.mxu0 %v3081_v40  ;;  %1817 = vmatpush1.bf16.msra.mxu1 %v3084_v41  ;;  %v3171_v40 = vld [vmem:[#allocation2 + $0x4e0] ss:$16 sps:$4 sm:$0xff]   ;;  %v3174_v41 = vld [vmem:[#allocation2 + $0x4e8] ss:$16 sps:$4 sm:$0xff]  }
  0x89   :  { %1654 = vmatprep.subr.bf16.mxu0 %v3089_v42  ;;  %1818 = vmatprep.subr.bf16.mxu1 %v3092_v43  ;;  %v3179_v42 = vld [vmem:[#allocation2 + $0x504] ss:$16 sps:$4 sm:$0xff]   ;;  %v3182_v43 = vld [vmem:[#allocation2 + $0x50c] ss:$16 sps:$4 sm:$0xff]  }
  0x8c   :  { %1655 = vmatpush1.bf16.msra.mxu0 %v3087_v44  ;;  %1819 = vmatpush1.bf16.msra.mxu1 %v3090_v45  ;;  %v3177_v44 = vld [vmem:[#allocation2 + $0x500] ss:$16 sps:$4 sm:$0xff]   ;;  %v3180_v45 = vld [vmem:[#allocation2 + $0x508] ss:$16 sps:$4 sm:$0xff]  }
  0x8d   :  { %1656 = vmatprep.subr.bf16.mxu0 %v3095_v46  ;;  %1820 = vmatprep.subr.bf16.mxu1 %v3098_v47  ;;  %v3185_v46 = vld [vmem:[#allocation2 + $0x524] ss:$16 sps:$4 sm:$0xff]   ;;  %v3188_v47 = vld [vmem:[#allocation2 + $0x52c] ss:$16 sps:$4 sm:$0xff]  }
  0x90   :  { %1657 = vmatpush1.bf16.msra.mxu0 %v3093_v48  ;;  %1821 = vmatpush1.bf16.msra.mxu1 %v3096_v49  ;;  %v3183_v48 = vld [vmem:[#allocation2 + $0x520] ss:$16 sps:$4 sm:$0xff]   ;;  %v3186_v49 = vld [vmem:[#allocation2 + $0x528] ss:$16 sps:$4 sm:$0xff]  }
  0x91   :  { %1658 = vmatprep.subr.bf16.mxu0 %v3101_v50  ;;  %1822 = vmatprep.subr.bf16.mxu1 %v3104_v51  ;;  %v3191_v50 = vld [vmem:[#allocation2 + $0x544] ss:$16 sps:$4 sm:$0xff]   ;;  %v3194_v51 = vld [vmem:[#allocation2 + $0x54c] ss:$16 sps:$4 sm:$0xff]  }
  0x94   :  { %1659 = vmatpush1.bf16.msra.mxu0 %v3099_v52  ;;  %1823 = vmatpush1.bf16.msra.mxu1 %v3102_v53  ;;  %v3189_v52 = vld [vmem:[#allocation2 + $0x540] ss:$16 sps:$4 sm:$0xff]   ;;  %v3192_v53 = vld [vmem:[#allocation2 + $0x548] ss:$16 sps:$4 sm:$0xff]  }
  0x95   :  { %1660 = vmatprep.subr.bf16.mxu0 %v3107_v54  ;;  %1824 = vmatprep.subr.bf16.mxu1 %v3110_v55  ;;  %v3197_v54 = vld [vmem:[#allocation2 + $0x564] ss:$16 sps:$4 sm:$0xff]   ;;  %v3200_v55 = vld [vmem:[#allocation2 + $0x56c] ss:$16 sps:$4 sm:$0xff]  }
  0x98   :  { %1661 = vmatpush1.bf16.msra.mxu0 %v3105_v56  ;;  %1825 = vmatpush1.bf16.msra.mxu1 %v3108_v57  ;;  %v3195_v56 = vld [vmem:[#allocation2 + $0x560] ss:$16 sps:$4 sm:$0xff]   ;;  %v3198_v57 = vld [vmem:[#allocation2 + $0x568] ss:$16 sps:$4 sm:$0xff]  }
  0x99   :  { %1662 = vmatprep.subr.bf16.mxu0 %v3113_v58  ;;  %1826 = vmatprep.subr.bf16.mxu1 %v3116_v59  ;;  %v3203_v58 = vld [vmem:[#allocation2 + $0x584] ss:$16 sps:$4 sm:$0xff]   ;;  %v3206_v59 = vld [vmem:[#allocation2 + $0x58c] ss:$16 sps:$4 sm:$0xff]  }
  0x9c   :  { %1663 = vmatpush1.bf16.msra.mxu0 %v3111_v60  ;;  %1827 = vmatpush1.bf16.msra.mxu1 %v3114_v61  ;;  %v3201_v60 = vld [vmem:[#allocation2 + $0x580] ss:$16 sps:$4 sm:$0xff]   ;;  %v3204_v61 = vld [vmem:[#allocation2 + $0x588] ss:$16 sps:$4 sm:$0xff]  }
  0x9d   :  { %1664 = vmatprep.subr.bf16.mxu0 %v3119_v62  ;;  %1828 = vmatprep.subr.bf16.mxu1 %v3122_v63  ;;  %v3209_v62 = vld [vmem:[#allocation2 + $0x5a4] ss:$16 sps:$4 sm:$0xff]   ;;  %v3212_v63 = vld [vmem:[#allocation2 + $0x5ac] ss:$16 sps:$4 sm:$0xff]  }
  0xa0   :  { %1665 = vmatpush1.bf16.msra.mxu0 %v3117_v0  ;;  %1829 = vmatpush1.bf16.msra.mxu1 %v3120_v1  ;;  %v3207_v0 = vld [vmem:[#allocation2 + $0x5a0] ss:$16 sps:$4 sm:$0xff]   ;;  %v3210_v1 = vld [vmem:[#allocation2 + $0x5a8] ss:$16 sps:$4 sm:$0xff]  }
  0xa1   :  { %1666 = vmatprep.subr.bf16.mxu0 %v3125_v2  ;;  %1830 = vmatprep.subr.bf16.mxu1 %v3128_v3  ;;  %v3215_v2 = vld [vmem:[#allocation2 + $0x5c4] ss:$16 sps:$4 sm:$0xff]   ;;  %v3218_v3 = vld [vmem:[#allocation2 + $0x5cc] ss:$16 sps:$4 sm:$0xff]  }
  0xa4   :  { %1667 = vmatpush1.bf16.msra.mxu0 %v3123_v4  ;;  %1831 = vmatpush1.bf16.msra.mxu1 %v3126_v5  ;;  %v3213_v4 = vld [vmem:[#allocation2 + $0x5c0] ss:$16 sps:$4 sm:$0xff]   ;;  %v3216_v5 = vld [vmem:[#allocation2 + $0x5c8] ss:$16 sps:$4 sm:$0xff]  }
  0xa5   :  { %1677 = vmatprep.subr.bf16.mxu0 %v3131_v6  ;;  %1841 = vmatprep.subr.bf16.mxu1 %v3134_v8  ;;  %v3221_v6 = vld [vmem:[#allocation2 + $0x5e4] ss:$16 sps:$4 sm:$0xff]   ;;  %v3219_v8 = vld [vmem:[#allocation2 + $0x5e0] ss:$16 sps:$4 sm:$0xff]  }
  0xa7   :  { %1669 = vmatmul.mubr.bf16.vlgmr.msra.gmra.mrb[0].mxu0 %v53_v11  ;;  %1833 = vmatmul.mubr.bf16.vlgmr.msra.gmra.mrb[0].mxu1 %v53_v11  ;;  %v47_v11 = vld [vmem:[%s3518_s0 + $0x20] sm:$0xff] }
  0xa8   :  { %1678 = vmatpush1.bf16.msra.mxu0 %v3129_v9  ;;  %1842 = vmatpush1.bf16.msra.mxu1 %v3132_v10  ;;  %v3222_v9 = vld [vmem:[#allocation2 + $0x5e8] ss:$16 sps:$4 sm:$0xff]   ;;  %v3227_v10 = vld [vmem:[#allocation2 + $0x604] ss:$16 sps:$4 sm:$0xff]  }
  0xa9   :  { %1679 = vmatprep.subr.bf16.mxu0 %v3137_v12  ;;  %1843 = vmatprep.subr.bf16.mxu1 %v3140_v13  ;;  %v3230_v12 = vld [vmem:[#allocation2 + $0x60c] ss:$16 sps:$4 sm:$0xff]   ;;  %v3225_v13 = vld [vmem:[#allocation2 + $0x600] ss:$16 sps:$4 sm:$0xff]  }
  0xaa   :  { %1709 = vmatprep.mubr.bf16.mxu0 %v56_v15  ;;  %1873 = vmatprep.mubr.bf16.mxu1 %v56_v15  ;;  %v55_v15 = vpack.c.bf16 %v47_v11, %v47_v11  ;;  %v3320_v11 = vld [vmem:[#allocation2 + $0x7ec] ss:$16 sps:$4 sm:$0xff]  }
  0xac   :  { %1680 = vmatpush1.bf16.msra.mxu0 %v3135_v16  ;;  %1844 = vmatpush1.bf16.msra.mxu1 %v3138_v17  ;;  %v50_v16 = vld [vmem:[%s3518_s0 + $0x38] sm:$0xff]  ;;  %v3233_v17 = vld [vmem:[#allocation2 + $0x624] ss:$16 sps:$4 sm:$0xff]  }
  0xad   :  { %1681 = vmatprep.subr.bf16.mxu0 %v3143_v18  ;;  %1845 = vmatprep.subr.bf16.mxu1 %v3146_v19  ;;  %v3236_v18 = vld [vmem:[#allocation2 + $0x62c] ss:$16 sps:$4 sm:$0xff]   ;;  %v3231_v19 = vld [vmem:[#allocation2 + $0x620] ss:$16 sps:$4 sm:$0xff]  }
  0xb0   :  { %1682 = vmatpush1.bf16.msra.mxu0 %v3141_v20  ;;  %1846 = vmatpush1.bf16.msra.mxu1 %v3144_v21  ;;  %v58_v20 = vpack.c.bf16 %v50_v16, %v50_v16  ;;  %v3234_v21 = vld [vmem:[#allocation2 + $0x628] ss:$16 sps:$4 sm:$0xff]   ;;  %v3322_v16 = vld [vmem:[#allocation4 + $0xc0] sm:$0xff]  }
  0xb1   :  { %1683 = vmatprep.subr.bf16.mxu0 %v3149_v22  ;;  %1847 = vmatprep.subr.bf16.mxu1 %v3152_v23  ;;  %v3239_v22 = vld [vmem:[#allocation2 + $0x644] ss:$16 sps:$4 sm:$0xff]   ;;  %v3242_v23 = vld [vmem:[#allocation2 + $0x64c] ss:$16 sps:$4 sm:$0xff]  }
  0xb4   :  { %1684 = vmatpush1.bf16.msra.mxu0 %v3147_v24  ;;  %1848 = vmatpush1.bf16.msra.mxu1 %v3150_v25  ;;  %v3237_v24 = vld [vmem:[#allocation2 + $0x640] ss:$16 sps:$4 sm:$0xff]   ;;  %v3240_v25 = vld [vmem:[#allocation2 + $0x648] ss:$16 sps:$4 sm:$0xff]  }
  0xb5   :  { %1685 = vmatprep.subr.bf16.mxu0 %v3155_v26  ;;  %1849 = vmatprep.subr.bf16.mxu1 %v3158_v27  ;;  %v3245_v26 = vld [vmem:[#allocation2 + $0x664] ss:$16 sps:$4 sm:$0xff]   ;;  %v3248_v27 = vld [vmem:[#allocation2 + $0x66c] ss:$16 sps:$4 sm:$0xff]  }
  0xb8   :  { %1686 = vmatpush1.bf16.msra.mxu0 %v3153_v28  ;;  %1850 = vmatpush1.bf16.msra.mxu1 %v3156_v29  ;;  %v3243_v28 = vld [vmem:[#allocation2 + $0x660] ss:$16 sps:$4 sm:$0xff]   ;;  %v3246_v29 = vld [vmem:[#allocation2 + $0x668] ss:$16 sps:$4 sm:$0xff]  }
  0xb9   :  { %1687 = vmatprep.subr.bf16.mxu0 %v3161_v30  ;;  %1851 = vmatprep.subr.bf16.mxu1 %v3164_v31  ;;  %v3251_v30 = vld [vmem:[#allocation2 + $0x684] ss:$16 sps:$4 sm:$0xff]   ;;  %v3254_v31 = vld [vmem:[#allocation2 + $0x68c] ss:$16 sps:$4 sm:$0xff]  }
  0xbc   :  { %1688 = vmatpush1.bf16.msra.mxu0 %v3159_v32  ;;  %1852 = vmatpush1.bf16.msra.mxu1 %v3162_v33  ;;  %v3249_v32 = vld [vmem:[#allocation2 + $0x680] ss:$16 sps:$4 sm:$0xff]   ;;  %v3252_v33 = vld [vmem:[#allocation2 + $0x688] ss:$16 sps:$4 sm:$0xff]  }
  0xbd   :  { %1689 = vmatprep.subr.bf16.mxu0 %v3167_v34  ;;  %1853 = vmatprep.subr.bf16.mxu1 %v3170_v35  ;;  %v3257_v34 = vld [vmem:[#allocation2 + $0x6a4] ss:$16 sps:$4 sm:$0xff]   ;;  %v3260_v35 = vld [vmem:[#allocation2 + $0x6ac] ss:$16 sps:$4 sm:$0xff]  }
  0xc0   :  { %1690 = vmatpush1.bf16.msra.mxu0 %v3165_v36  ;;  %1854 = vmatpush1.bf16.msra.mxu1 %v3168_v37  ;;  %v3255_v36 = vld [vmem:[#allocation2 + $0x6a0] ss:$16 sps:$4 sm:$0xff]   ;;  %v3258_v37 = vld [vmem:[#allocation2 + $0x6a8] ss:$16 sps:$4 sm:$0xff]  }
  0xc1   :  { %1691 = vmatprep.subr.bf16.mxu0 %v3173_v38  ;;  %1855 = vmatprep.subr.bf16.mxu1 %v3176_v39  ;;  %v3263_v38 = vld [vmem:[#allocation2 + $0x6c4] ss:$16 sps:$4 sm:$0xff]   ;;  %v3266_v39 = vld [vmem:[#allocation2 + $0x6cc] ss:$16 sps:$4 sm:$0xff]  }
  0xc4   :  { %1692 = vmatpush1.bf16.msra.mxu0 %v3171_v40  ;;  %1856 = vmatpush1.bf16.msra.mxu1 %v3174_v41  ;;  %v3261_v40 = vld [vmem:[#allocation2 + $0x6c0] ss:$16 sps:$4 sm:$0xff]   ;;  %v3264_v41 = vld [vmem:[#allocation2 + $0x6c8] ss:$16 sps:$4 sm:$0xff]  }
  0xc5   :  { %1693 = vmatprep.subr.bf16.mxu0 %v3179_v42  ;;  %1857 = vmatprep.subr.bf16.mxu1 %v3182_v43  ;;  %v3269_v42 = vld [vmem:[#allocation2 + $0x6e4] ss:$16 sps:$4 sm:$0xff]   ;;  %v3272_v43 = vld [vmem:[#allocation2 + $0x6ec] ss:$16 sps:$4 sm:$0xff]  }
  0xc8   :  { %1694 = vmatpush1.bf16.msra.mxu0 %v3177_v44  ;;  %1858 = vmatpush1.bf16.msra.mxu1 %v3180_v45  ;;  %v3267_v44 = vld [vmem:[#allocation2 + $0x6e0] ss:$16 sps:$4 sm:$0xff]   ;;  %v3270_v45 = vld [vmem:[#allocation2 + $0x6e8] ss:$16 sps:$4 sm:$0xff]  }
  0xc9   :  { %1695 = vmatprep.subr.bf16.mxu0 %v3185_v46  ;;  %1859 = vmatprep.subr.bf16.mxu1 %v3188_v47  ;;  %v3275_v46 = vld [vmem:[#allocation2 + $0x704] ss:$16 sps:$4 sm:$0xff]   ;;  %v3278_v47 = vld [vmem:[#allocation2 + $0x70c] ss:$16 sps:$4 sm:$0xff]  }
  0xcc   :  { %1696 = vmatpush1.bf16.msra.mxu0 %v3183_v48  ;;  %1860 = vmatpush1.bf16.msra.mxu1 %v3186_v49  ;;  %v3273_v48 = vld [vmem:[#allocation2 + $0x700] ss:$16 sps:$4 sm:$0xff]   ;;  %v3276_v49 = vld [vmem:[#allocation2 + $0x708] ss:$16 sps:$4 sm:$0xff]  }
  0xcd   :  { %1697 = vmatprep.subr.bf16.mxu0 %v3191_v50  ;;  %1861 = vmatprep.subr.bf16.mxu1 %v3194_v51  ;;  %v3281_v50 = vld [vmem:[#allocation2 + $0x724] ss:$16 sps:$4 sm:$0xff]   ;;  %v3284_v51 = vld [vmem:[#allocation2 + $0x72c] ss:$16 sps:$4 sm:$0xff]  }
  0xd0   :  { %1698 = vmatpush1.bf16.msra.mxu0 %v3189_v52  ;;  %1862 = vmatpush1.bf16.msra.mxu1 %v3192_v53  ;;  %v3279_v52 = vld [vmem:[#allocation2 + $0x720] ss:$16 sps:$4 sm:$0xff]   ;;  %v3282_v53 = vld [vmem:[#allocation2 + $0x728] ss:$16 sps:$4 sm:$0xff]  }
  0xd1   :  { %1699 = vmatprep.subr.bf16.mxu0 %v3197_v54  ;;  %1863 = vmatprep.subr.bf16.mxu1 %v3200_v55  ;;  %v3287_v54 = vld [vmem:[#allocation2 + $0x744] ss:$16 sps:$4 sm:$0xff]   ;;  %v3290_v55 = vld [vmem:[#allocation2 + $0x74c] ss:$16 sps:$4 sm:$0xff]  }
  0xd4   :  { %1700 = vmatpush1.bf16.msra.mxu0 %v3195_v56  ;;  %1864 = vmatpush1.bf16.msra.mxu1 %v3198_v57  ;;  %v3285_v56 = vld [vmem:[#allocation2 + $0x740] ss:$16 sps:$4 sm:$0xff]   ;;  %v3288_v57 = vld [vmem:[#allocation2 + $0x748] ss:$16 sps:$4 sm:$0xff]  }
  0xd5   :  { %1701 = vmatprep.subr.bf16.mxu0 %v3203_v58  ;;  %1865 = vmatprep.subr.bf16.mxu1 %v3206_v59  ;;  %v3293_v58 = vld [vmem:[#allocation2 + $0x764] ss:$16 sps:$4 sm:$0xff]   ;;  %v3296_v59 = vld [vmem:[#allocation2 + $0x76c] ss:$16 sps:$4 sm:$0xff]  }
  0xd8   :  { %1702 = vmatpush1.bf16.msra.mxu0 %v3201_v60  ;;  %1866 = vmatpush1.bf16.msra.mxu1 %v3204_v61  ;;  %v3291_v60 = vld [vmem:[#allocation2 + $0x760] ss:$16 sps:$4 sm:$0xff]   ;;  %v3294_v61 = vld [vmem:[#allocation2 + $0x768] ss:$16 sps:$4 sm:$0xff]  }
  0xd9   :  { %1703 = vmatprep.subr.bf16.mxu0 %v3209_v62  ;;  %1867 = vmatprep.subr.bf16.mxu1 %v3212_v63  ;;  %v3299_v62 = vld [vmem:[#allocation2 + $0x784] ss:$16 sps:$4 sm:$0xff]   ;;  %v3302_v63 = vld [vmem:[#allocation2 + $0x78c] ss:$16 sps:$4 sm:$0xff]  }
  0xdc   :  { %1704 = vmatpush1.bf16.msra.mxu0 %v3207_v0  ;;  %1868 = vmatpush1.bf16.msra.mxu1 %v3210_v1  ;;  %v3297_v0 = vld [vmem:[#allocation2 + $0x780] ss:$16 sps:$4 sm:$0xff]   ;;  %v3300_v1 = vld [vmem:[#allocation2 + $0x788] ss:$16 sps:$4 sm:$0xff]  }
  0xdd   :  { %1705 = vmatprep.subr.bf16.mxu0 %v3215_v2  ;;  %1869 = vmatprep.subr.bf16.mxu1 %v3218_v3  ;;  %v3305_v2 = vld [vmem:[#allocation2 + $0x7a4] ss:$16 sps:$4 sm:$0xff]   ;;  %v3308_v3 = vld [vmem:[#allocation2 + $0x7ac] ss:$16 sps:$4 sm:$0xff]  }
  0xe0   :  { %1706 = vmatpush1.bf16.msra.mxu0 %v3213_v4  ;;  %1870 = vmatpush1.bf16.msra.mxu1 %v3216_v5  ;;  %v3303_v4 = vld [vmem:[#allocation2 + $0x7a0] ss:$16 sps:$4 sm:$0xff]   ;;  %v3306_v5 = vld [vmem:[#allocation2 + $0x7a8] ss:$16 sps:$4 sm:$0xff]  }
  0xe1   :  { %1707 = vmatprep.subr.bf16.mxu0 %v3221_v6  ;;  %1871 = vmatprep.subr.bf16.mxu1 %v3224_v7  ;;  %v3311_v6 = vld [vmem:[#allocation2 + $0x7c4] ss:$16 sps:$4 sm:$0xff]   ;;  %v3314_v7 = vld [vmem:[#allocation2 + $0x7cc] ss:$16 sps:$4 sm:$0xff]  }
  0xe4   :  { %1708 = vmatpush1.bf16.msra.mxu0 %v3219_v8  ;;  %1872 = vmatpush1.bf16.msra.mxu1 %v3222_v9  ;;  %v3309_v8 = vld [vmem:[#allocation2 + $0x7c0] ss:$16 sps:$4 sm:$0xff]   ;;  %v3312_v9 = vld [vmem:[#allocation2 + $0x7c8] ss:$16 sps:$4 sm:$0xff]  }
  0xe5   :  { %1718 = vmatprep.subr.bf16.mxu0 %v3227_v10  ;;  %1882 = vmatprep.subr.bf16.mxu1 %v3230_v12  ;;  %v3317_v10 = vld [vmem:[#allocation2 + $0x7e4] ss:$16 sps:$4 sm:$0xff]   ;;  %v3315_v12 = vld [vmem:[#allocation2 + $0x7e0] ss:$16 sps:$4 sm:$0xff]  }
  0xe7   :  { %1710 = vmatmul.mubr.bf16.vlgmr.msra.gmra.mrb[0].mxu0 %v55_v15  ;;  %1874 = vmatmul.mubr.bf16.vlgmr.msra.gmra.mrb[0].mxu1 %v55_v15  ;;  %v3321_v15 = vld [vmem:[#allocation4 + $0x40] sm:$0xff]  }
  0xe8   :  { %1719 = vmatpush1.bf16.msra.mxu0 %v3225_v13  ;;  %1883 = vmatpush1.bf16.msra.mxu1 %v3228_v14  ;;  %v3318_v13 = vld [vmem:[#allocation2 + $0x7e8] ss:$16 sps:$4 sm:$0xff]   ;;  %v49_v14 = vld [vmem:[%s3518_s0 + $0x30] sm:$0xff] }
  0xe9   :  { %1720 = vmatprep.subr.bf16.mxu0 %v3233_v17  ;;  %1884 = vmatprep.subr.bf16.mxu1 %v3236_v18  ;;  %v57_v17 = vpack.c.bf16 %v49_v14, %v49_v14  ;;  %v3323_v18 = vld [vmem:[#allocation4] sm:$0xff]   ;;  %v3366_v14 = vld [vmem:[#allocation4 + $0x168] sm:$0xff]  }
  0xea   :  { %1750 = vmatprep.mubr.bf16.mxu0 %v58_v20  ;;  %1914 = vmatprep.mubr.bf16.mxu1 %v58_v20  ;;  %v3325_v20 = vld [vmem:[#allocation4 + $0x48] sm:$0xff]  }
  0xec   :  { %1721 = vmatpush1.bf16.msra.mxu0 %v3231_v19  ;;  %1885 = vmatpush1.bf16.msra.mxu1 %v3234_v21  ;;  %v3324_v19 = vld [vmem:[#allocation4 + $0x80] sm:$0xff]   ;;  %v3326_v21 = vld [vmem:[#allocation4 + $0xc8] sm:$0xff]  }
  0xed   :  { %1722 = vmatprep.subr.bf16.mxu0 %v3239_v22  ;;  %1886 = vmatprep.subr.bf16.mxu1 %v3242_v23  ;;  %v3327_v22 = vld [vmem:[#allocation4 + $0x8] sm:$0xff]  }
  0xee   :  { %v3328_v23 = vld [vmem:[#allocation4 + $0x88] sm:$0xff]  }
  0xf0   :  { %1723 = vmatpush1.bf16.msra.mxu0 %v3237_v24  ;;  %1887 = vmatpush1.bf16.msra.mxu1 %v3240_v25  ;;  %v3329_v24 = vld [vmem:[#allocation4 + $0x50] sm:$0xff]  }
  0xf1   :  { %1724 = vmatprep.subr.bf16.mxu0 %v3245_v26  ;;  %1888 = vmatprep.subr.bf16.mxu1 %v3248_v27  ;;  %v3330_v25 = vld [vmem:[#allocation4 + $0xd0] sm:$0xff]  }
  0xf2   :  { %v3331_v26 = vld [vmem:[#allocation4 + $0x10] sm:$0xff]  }
  0xf3   :  { %v3332_v27 = vld [vmem:[#allocation4 + $0x90] sm:$0xff]  }
  0xf4   :  { %1725 = vmatpush1.bf16.msra.mxu0 %v3243_v28  ;;  %1889 = vmatpush1.bf16.msra.mxu1 %v3246_v29  ;;  %v3333_v28 = vld [vmem:[#allocation4 + $0x58] sm:$0xff]  }
  0xf5   :  { %1726 = vmatprep.subr.bf16.mxu0 %v3251_v30  ;;  %1890 = vmatprep.subr.bf16.mxu1 %v3254_v31  ;;  %v3334_v29 = vld [vmem:[#allocation4 + $0xd8] sm:$0xff]  }
  0xf6   :  { %v3335_v30 = vld [vmem:[#allocation4 + $0x18] sm:$0xff]  }
  0xf7   :  { %v3336_v31 = vld [vmem:[#allocation4 + $0x98] sm:$0xff]  }
  0xf8   :  { %1727 = vmatpush1.bf16.msra.mxu0 %v3249_v32  ;;  %1891 = vmatpush1.bf16.msra.mxu1 %v3252_v33  ;;  %v3337_v32 = vld [vmem:[#allocation4 + $0x60] sm:$0xff]  }
  0xf9   :  { %1728 = vmatprep.subr.bf16.mxu0 %v3257_v34  ;;  %1892 = vmatprep.subr.bf16.mxu1 %v3260_v35  ;;  %v3338_v33 = vld [vmem:[#allocation4 + $0xe0] sm:$0xff]  }
  0xfa   :  { %v3339_v34 = vld [vmem:[#allocation4 + $0x20] sm:$0xff]  }
  0xfb   :  { %v3340_v35 = vld [vmem:[#allocation4 + $0xa0] sm:$0xff]  }
  0xfc   :  { %1729 = vmatpush1.bf16.msra.mxu0 %v3255_v36  ;;  %1893 = vmatpush1.bf16.msra.mxu1 %v3258_v37  ;;  %v3341_v36 = vld [vmem:[#allocation4 + $0x68] sm:$0xff]  }
  0xfd   :  { %1730 = vmatprep.subr.bf16.mxu0 %v3263_v38  ;;  %1894 = vmatprep.subr.bf16.mxu1 %v3266_v39  ;;  %v3342_v37 = vld [vmem:[#allocation4 + $0xe8] sm:$0xff]  }
  0xfe   :  { %v3343_v38 = vld [vmem:[#allocation4 + $0x28] sm:$0xff]  }
  0xff   :  { %v3344_v39 = vld [vmem:[#allocation4 + $0xa8] sm:$0xff]  }
 0x100   :  { %1731 = vmatpush1.bf16.msra.mxu0 %v3261_v40  ;;  %1895 = vmatpush1.bf16.msra.mxu1 %v3264_v41  ;;  %v3345_v40 = vld [vmem:[#allocation4 + $0x70] sm:$0xff]  }
 0x101   :  { %1732 = vmatprep.subr.bf16.mxu0 %v3269_v42  ;;  %1896 = vmatprep.subr.bf16.mxu1 %v3272_v43  ;;  %v3346_v41 = vld [vmem:[#allocation4 + $0xf0] sm:$0xff]  }
 0x102   :  { %v3347_v42 = vld [vmem:[#allocation4 + $0x30] sm:$0xff]  }
 0x103   :  { %v3348_v43 = vld [vmem:[#allocation4 + $0xb0] sm:$0xff]  }
 0x104   :  { %1733 = vmatpush1.bf16.msra.mxu0 %v3267_v44  ;;  %1897 = vmatpush1.bf16.msra.mxu1 %v3270_v45  ;;  %v3349_v44 = vld [vmem:[#allocation4 + $0x78] sm:$0xff]  }
 0x105   :  { %1734 = vmatprep.subr.bf16.mxu0 %v3275_v46  ;;  %1898 = vmatprep.subr.bf16.mxu1 %v3278_v47  ;;  %v3350_v45 = vld [vmem:[#allocation4 + $0xf8] sm:$0xff]  }
 0x106   :  { %v3351_v46 = vld [vmem:[#allocation4 + $0x38] sm:$0xff]  }
 0x107   :  { %v3352_v47 = vld [vmem:[#allocation4 + $0xb8] sm:$0xff]  }
 0x108   :  { %1735 = vmatpush1.bf16.msra.mxu0 %v3273_v48  ;;  %1899 = vmatpush1.bf16.msra.mxu1 %v3276_v49  ;;  %v3427_v48 = vmov 0.0  }
 0x109   :  { %1736 = vmatprep.subr.bf16.mxu0 %v3281_v50  ;;  %1900 = vmatprep.subr.bf16.mxu1 %v3284_v51 }
 0x10c   :  { %1737 = vmatpush1.bf16.msra.mxu0 %v3279_v52  ;;  %1901 = vmatpush1.bf16.msra.mxu1 %v3282_v53 }
 0x10d   :  { %1738 = vmatprep.subr.bf16.mxu0 %v3287_v54  ;;  %1902 = vmatprep.subr.bf16.mxu1 %v3290_v55 }
 0x110   :  { %1739 = vmatpush1.bf16.msra.mxu0 %v3285_v56  ;;  %1903 = vmatpush1.bf16.msra.mxu1 %v3288_v57 }
 0x111   :  { %1740 = vmatprep.subr.bf16.mxu0 %v3293_v58  ;;  %1904 = vmatprep.subr.bf16.mxu1 %v3296_v59 }
 0x114   :  { %1741 = vmatpush1.bf16.msra.mxu0 %v3291_v60  ;;  %1905 = vmatpush1.bf16.msra.mxu1 %v3294_v61 }
 0x115   :  { %1742 = vmatprep.subr.bf16.mxu0 %v3299_v62  ;;  %1906 = vmatprep.subr.bf16.mxu1 %v3302_v63  ;;  %v3353_v63 = vld [vmem:[#allocation4 + $0x100] sm:$0xff]  }
 0x118   :  { %1743 = vmatpush1.bf16.msra.mxu0 %v3297_v0  ;;  %1907 = vmatpush1.bf16.msra.mxu1 %v3300_v1 }
 0x119   :  { %1744 = vmatprep.subr.bf16.mxu0 %v3305_v2  ;;  %1908 = vmatprep.subr.bf16.mxu1 %v3308_v3  ;;  %v3354_v2 = vld [vmem:[#allocation4 + $0x108] sm:$0xff]   ;;  %v3355_v3 = vld [vmem:[#allocation4 + $0x110] sm:$0xff]  }
 0x11c   :  { %1745 = vmatpush1.bf16.msra.mxu0 %v3303_v4  ;;  %1909 = vmatpush1.bf16.msra.mxu1 %v3306_v5  ;;  %v3356_v4 = vld [vmem:[#allocation4 + $0x118] sm:$0xff]   ;;  %v3357_v5 = vld [vmem:[#allocation4 + $0x120] sm:$0xff]  }
 0x11d   :  { %1746 = vmatprep.subr.bf16.mxu0 %v3311_v6  ;;  %1910 = vmatprep.subr.bf16.mxu1 %v3314_v7  ;;  %v3358_v6 = vld [vmem:[#allocation4 + $0x128] sm:$0xff]   ;;  %v3359_v7 = vld [vmem:[#allocation4 + $0x130] sm:$0xff]  }
 0x120   :  { %1747 = vmatpush1.bf16.msra.mxu0 %v3309_v8  ;;  %1911 = vmatpush1.bf16.msra.mxu1 %v3312_v9  ;;  %v3360_v8 = vld [vmem:[#allocation4 + $0x138] sm:$0xff]   ;;  %v3361_v9 = vld [vmem:[#allocation4 + $0x140] sm:$0xff]  }
 0x121   :  { %1748 = vmatprep.subr.bf16.mxu0 %v3317_v10  ;;  %1912 = vmatprep.subr.bf16.mxu1 %v3320_v11  ;;  %v3362_v10 = vld [vmem:[#allocation4 + $0x148] sm:$0xff]   ;;  %v3363_v11 = vld [vmem:[#allocation4 + $0x150] sm:$0xff]  }
 0x124   :  { %1749 = vmatpush1.bf16.msra.mxu0 %v3315_v12  ;;  %1913 = vmatpush1.bf16.msra.mxu1 %v3318_v13  ;;  %v3364_v12 = vld [vmem:[#allocation4 + $0x158] sm:$0xff]   ;;  %v3365_v13 = vld [vmem:[#allocation4 + $0x160] sm:$0xff]  }
 0x125   :  { %2803 = vmatprep.subr.bf16.mxu0 %v3321_v15  ;;  %2825 = vmatprep.subr.bf16.mxu1 %v3322_v16  ;;  %v3367_v15 = vld [vmem:[#allocation4 + $0x170] sm:$0xff]  }
 0x127   :  { %1751 = vmatmul.mubr.bf16.vlgmr.msra.gmra.mrb[0].mxu0 %v57_v17  ;;  %1915 = vmatmul.mubr.bf16.vlgmr.msra.gmra.mrb[0].mxu1 %v57_v17 }
 0x128   :  { %2804 = vmatpush3.bf16.msra.mxu0 %v3323_v18  ;;  %2826 = vmatpush3.bf16.msra.mxu1 %v3324_v19 }
 0x129   :  { %2805 = vmatprep.subr.bf16.mxu0 %v3325_v20  ;;  %2827 = vmatprep.subr.bf16.mxu1 %v3326_v21 }
 0x12c   :  { %2806 = vmatpush3.bf16.msra.mxu0 %v3327_v22  ;;  %2828 = vmatpush3.bf16.msra.mxu1 %v3328_v23 }
 0x12d   :  { %2807 = vmatprep.subr.bf16.mxu0 %v3329_v24  ;;  %2829 = vmatprep.subr.bf16.mxu1 %v3330_v25 }
 0x130   :  { %2808 = vmatpush3.bf16.msra.mxu0 %v3331_v26  ;;  %2830 = vmatpush3.bf16.msra.mxu1 %v3332_v27 }
 0x131   :  { %2809 = vmatprep.subr.bf16.mxu0 %v3333_v28  ;;  %2831 = vmatprep.subr.bf16.mxu1 %v3334_v29  ;;  %v3368_v29 = vld [vmem:[#allocation4 + $0x178] sm:$0xff]  }
 0x134   :  { %2810 = vmatpush3.bf16.msra.mxu0 %v3335_v30  ;;  %2832 = vmatpush3.bf16.msra.mxu1 %v3336_v31 }
 0x135   :  { %2811 = vmatprep.subr.bf16.mxu0 %v3337_v32  ;;  %2833 = vmatprep.subr.bf16.mxu1 %v3338_v33 }
 0x138   :  { %2812 = vmatpush3.bf16.msra.mxu0 %v3339_v34  ;;  %2834 = vmatpush3.bf16.msra.mxu1 %v3340_v35 }
 0x139   :  { %2813 = vmatprep.subr.bf16.mxu0 %v3341_v36  ;;  %2835 = vmatprep.subr.bf16.mxu1 %v3342_v37  ;;  %v2479_v36 = vlaneseq }
 0x13b   :  { %v2480_v37 = vand.u32 127, %v2479_v36 }
 0x13c   :  { %2814 = vmatpush3.bf16.msra.mxu0 %v3343_v38  ;;  %2836 = vmatpush3.bf16.msra.mxu1 %v3344_v39 }
 0x13d   :  { %2815 = vmatprep.subr.bf16.mxu0 %v3345_v40  ;;  %2837 = vmatprep.subr.bf16.mxu1 %v3346_v41  ;;  %vm2481_vm1 = vcmp.lt.s32.totalorder %v2480_v37, 3 }
 0x140   :  { %2816 = vmatpush3.bf16.msra.mxu0 %v3347_v42  ;;  %2838 = vmatpush3.bf16.msra.mxu1 %v3348_v43 }
 0x141   :  { %2817 = vmatprep.subr.bf16.mxu0 %v3349_v44  ;;  %2839 = vmatprep.subr.bf16.mxu1 %v3350_v45 }
 0x144   :  { %2818 = vmatpush3.bf16.msra.mxu0 %v3351_v46  ;;  %2840 = vmatpush3.bf16.msra.mxu1 %v3352_v47 }
 0x145   :  { %2865 = vmatprep.subr.bf16.mxu0 %v3427_v48  ;;  %2885 = vmatprep.subr.bf16.mxu1 %v3427_v48 }
 0x1fa   :  { %v1752_v49 = vpop.f32.mrb[0].mxu0  ;;  %v1916_v50 = vpop.f32.mrb[0].mxu1 }
 0x1fb   :  { %v1923_v51 = vmax.f32 %v1752_v49, 0.0  ;;  %v1925_v52 = vmax.f32 %v1916_v50, 0.0  ;;  %v1754_v53 = vpop.f32.mrb[1].mxu0  ;;  %v1918_v54 = vpop.f32.mrb[1].mxu1 }
 0x1fc   :  { %v1924_v55 = vmax.f32 %v1754_v53, 0.0  ;;  %v1926_v56 = vmax.f32 %v1918_v54, 0.0  ;;  %v1756_v57 = vpop.f32.mrb[2].mxu0  ;;  %v1920_v58 = vpop.f32.mrb[2].mxu1 }
 0x1fd   :  { %v1757_v59 = vpop.f32.mrb[3].mxu0  ;;  %v1921_v60 = vpop.f32.mrb[3].mxu1  ;;  %v1927_v0 = vpack.c.bf16 %v1923_v51, %v1923_v51  ;;  %v1929_v1 = vpack.c.bf16 %v1925_v52, %v1925_v52 }
 0x1fe   :  { %v1928_v61 = vpack.c.bf16 %v1924_v55, %v1924_v55  ;;  %v1930_v62 = vpack.c.bf16 %v1926_v56, %v1926_v56 }
 0x200   :  { %2219 = vmatprep.mubr.bf16.mxu0 %v1928_v61  ;;  %2259 = vmatprep.mubr.bf16.mxu1 %v1930_v62 }
 0x201   :  { %2220 = vmatmul.mubr.bf16.vlgmr.msra.gmra.mrb[4].mxu0 %v1927_v0  ;;  %2260 = vmatmul.mubr.bf16.vlgmr.msra.gmra.mrb[4].mxu1 %v1929_v1 }
 0x202   :  { %2866 = vmatpush3.bf16.msra.mxu0 %v3353_v63  ;;  %2881 = vmatprep.mubr.msk.bf16.mxu0 %vm3428_vm0, %v3427_v48 }
 0x203   :  { %2867 = vmatprep.subr.bf16.mxu0 %v3427_v48  ;;  %2901 = vmatprep.mubr.msk.bf16.mxu1 %vm3428_vm0, %v3427_v48 }
 0x204   :  { %2886 = vmatpush3.bf16.msra.mxu1 %v3361_v9 }
 0x205   :  { %2887 = vmatprep.subr.bf16.mxu1 %v3427_v48 }
 0x206   :  { %2868 = vmatpush3.bf16.msra.mxu0 %v3354_v2 }
 0x207   :  { %2869 = vmatprep.subr.bf16.mxu0 %v3427_v48 }
 0x208   :  { %2888 = vmatpush3.bf16.msra.mxu1 %v3362_v10 }
 0x209   :  { %2889 = vmatprep.subr.bf16.mxu1 %v3427_v48 }
 0x20a   :  { %2870 = vmatpush3.bf16.msra.mxu0 %v3355_v3 }
 0x20b   :  { %2871 = vmatprep.subr.bf16.mxu0 %v3427_v48 }
 0x20c   :  { %2890 = vmatpush3.bf16.msra.mxu1 %v3363_v11 }
 0x20d   :  { %2891 = vmatprep.subr.bf16.mxu1 %v3427_v48 }
 0x20e   :  { %2872 = vmatpush3.bf16.msra.mxu0 %v3356_v4 }
 0x20f   :  { %2873 = vmatprep.subr.bf16.mxu0 %v3427_v48 }
 0x210   :  { %2892 = vmatpush3.bf16.msra.mxu1 %v3364_v12 }
 0x211   :  { %2893 = vmatprep.subr.bf16.mxu1 %v3427_v48 }
 0x212   :  { %2874 = vmatpush3.bf16.msra.mxu0 %v3357_v5 }
 0x213   :  { %2875 = vmatprep.subr.bf16.mxu0 %v3427_v48 }
 0x214   :  { %2894 = vmatpush3.bf16.msra.mxu1 %v3365_v13 }
 0x215   :  { %2895 = vmatprep.subr.bf16.mxu1 %v3427_v48 }
 0x216   :  { %2876 = vmatpush3.bf16.msra.mxu0 %v3358_v6 }
 0x217   :  { %2877 = vmatprep.subr.bf16.mxu0 %v3427_v48 }
 0x218   :  { %2896 = vmatpush3.bf16.msra.mxu1 %v3366_v14 }
 0x219   :  { %2897 = vmatprep.subr.bf16.mxu1 %v3427_v48 }
 0x21a   :  { %2878 = vmatpush3.bf16.msra.mxu0 %v3359_v7 }
 0x21b   :  { %2879 = vmatprep.subr.bf16.mxu0 %v3427_v48 }
 0x21c   :  { %2898 = vmatpush3.bf16.msra.mxu1 %v3367_v15 }
 0x21d   :  { %2899 = vmatprep.subr.bf16.mxu1 %v3427_v48 }
 0x21e   :  { %2880 = vmatpush3.bf16.msra.mxu0 %v3360_v8 }
 0x220   :  { %2900 = vmatpush3.bf16.msra.mxu1 %v3368_v29 }
 0x2d4   :  { %v2819_v16 = vpop.f32.mrb[4].mxu0  ;;  %v2841_v17 = vpop.f32.mrb[4].mxu1 }
 0x2d5   :  { %v2820_v18 = vpop.f32.mrb[5].mxu0  ;;  %v2842_v19 = vpop.f32.mrb[5].mxu1 }
 0x2d6   :  { %v2821_v20 = vadd.f32 %v2820_v18, %v2819_v16  ;;  %v2843_v21 = vadd.f32 %v2842_v19, %v2841_v17  ;;  %v2822_v22 = vpop.f32.mrb[6].mxu0  ;;  %v2844_v23 = vpop.f32.mrb[6].mxu1 }
 0x2d7   :  { %v2823_v24 = vpop.f32.mrb[7].mxu0  ;;  %v2845_v25 = vpop.f32.mrb[7].mxu1 }
 0x2d8   :  { %v2262_v26 = vadd.f32 %v2843_v21, %v2821_v20 }
 0x2da   :  { %v2267_v27 = vmax.f32 %v2262_v26, 0.0 }
 0x2dc   :  { %v2268_v28 = vpack.c.bf16 %v2267_v27, %v2267_v27 }
 0x2de   :  { %2882 = vmatmul.mubr.bf16.vlgmr.msra.gmra.mrb[8].mxu0 %v2268_v28 }
 0x3b1   :  { %v2367_v30 = vpop.f32.mrb[8].mxu0 }
 0x3b2   :  { %v2373_v31 = vmax.f32 %v2367_v30, 0.0  ;;  %v2883_v32 = vpop.f32.mrb[9].mxu0 }
 0x3b3   :  { %v2370_v33 = vpop.f32.mrb[10].mxu0 }
 0x3b4   :  { %v2374_v34 = vpack.c.bf16 %v2373_v31, %v2373_v31  ;;  %v2884_v35 = vpop.f32.mrb[11].mxu0 }
 0x3b6   :  { %2902 = vmatmul.mubr.bf16.vlgmr.msra.gmra.mrb[8].mxu1 %v2374_v34 }
 0x489   :  { %v2473_v38 = vpop.f32.mrb[8].mxu1 }
 0x48a   :  { %v2903_v39 = vpop.f32.mrb[9].mxu1  ;;  %v2482_v40 = vsel %vm2481_vm1, %v2473_v38, -inf }
 0x48b   :  { %2483 = vmax.xlane.f32.xlu0 %v2482_v40  ;;  %v2476_v41 = vpop.f32.mrb[10].mxu1 }
 0x48c   :  { %v2904_v42 = vpop.f32.mrb[11].mxu1 }
 0x518   :  { %v2484_v43 = vpop.xlane.xlu0 %2483 }
 0x519   :  { %v2485_v44 = vsub.f32 %v2482_v40, %v2484_v43 }
 0x51b   :  { %v2486_v45 = vmul.f32 1.442695, %v2485_v44 }
 0x51d   :  { %3369 = vpow2.f32 %v2486_v45 }
 0x527   :  { %v3370_v46 = vpop.eup %3369 }
 0x528   :  { %2488 = vadd.xlane.f32.xlu0 %v3370_v46 }
 0x5b5   :  { %v2489_v47 = vpop.xlane.xlu0 %2488 }
 0x5b6   :  { %3371 = vrcp.f32 %v2489_v47 }
 0x5c0   :  { %v3372_v48 = vpop.eup %3371 }
 0x5c1   :  { %v2491_v49 = vmul.f32 %v3372_v48, %v3370_v46 }
 0x5c3   :  { %2492 = vst [vmem:[%s3521_s3] sm:$0xff] %v2491_v49 }
 0x5c4   :  { %2497 = vsyncpa [#allocation3], 1 }
 0x5c5   :  { %2498 = vsyncpa [#allocation5], 1 }

</bundles_post_ra>
